<compile_context>
chip_gen: v7x
topology: tpu7x:2x2x1
jax: 0.10.0
libtpu: 0.0.40
codegen_flags: <defaults>
</compile_context>

<pallas_src>
import functools

import jax
import jax.numpy as jnp
from jax import lax
from jax.experimental import pallas as pl
from jax.experimental.pallas import tpu as pltpu

BN_EPS = 1e-5
_LANES = 128


# ---------------------------------------------------------------------------
# Pass 1: conv-as-matmul (lane-dense via block-diagonal weight) + batch stats.
# Grid = (core, tile); core axis "parallel" (2 TCs on v7x), tile axis
# "arbitrary" (stats block is a resident accumulator along it).
# ---------------------------------------------------------------------------
def _conv_stats_kernel(p_ref, w_ref, b_ref, y_ref, stats_ref):
    # p_ref     : [tile_mp, G*K]    packed im2col patch rows (f32 or bf16)
    # w_ref     : [G*K, G*Cout]     block-diagonal weight kron(I_G, W)
    # b_ref     : [1, G*Cout]       conv bias tiled G times along lanes (f32)
    # y_ref     : [tile_mp, G*Cout] conv output tile (f32, lane-dense)
    # stats_ref : [2, G*Cout]       this core's resident [sum; sum_sq] accumulator
    y = jnp.dot(p_ref[...], w_ref[...], preferred_element_type=jnp.float32)
    y = y + b_ref[...]
    y_ref[...] = y

    @pl.when(pl.program_id(1) == 0)
    def _init():
        stats_ref[...] = jnp.zeros_like(stats_ref)

    stats_ref[0:1, :] += jnp.sum(y, axis=0, keepdims=True)
    stats_ref[1:2, :] += jnp.sum(y * y, axis=0, keepdims=True)


# ---------------------------------------------------------------------------
# Pass 2: BN affine (pre-folded scale/shift) + Mish, fully lane-dense.
# ---------------------------------------------------------------------------
def _bn_mish_kernel(y_ref, params_ref, o_ref):
    # y_ref: [tile_mp, G*Cout]; params_ref: [2, G*Cout] = [scale; shift]
    z = y_ref[...] * params_ref[0:1, :] + params_ref[1:2, :]

    # Mish(z) = z * tanh(softplus(z)); one exp, one exact divide:
    #   u = exp(-|z|), w = where(z>=0, u, 1)  =>  e^{-softplus(z)} = w/(1+u)
    #   tanh(softplus(z)) = ((1+u)^2 - w^2) / ((1+u)^2 + w^2)
    u = jnp.exp(-jnp.abs(z))
    w = jnp.where(z >= 0.0, u, 1.0)
    a = 1.0 + u
    aa = a * a
    ww = w * w
    tanh_sp = (aa - ww) / (aa + ww)
    o_ref[...] = (z * tanh_sp).astype(o_ref.dtype)


# ---------------------------------------------------------------------------
# Wrapper helpers
# ---------------------------------------------------------------------------
def _im2col(x, kh, kw, stride, padding):
    """NCHW -> im2col patches [M, K]; K ordered (kh, kw, Cin), Cin fastest."""
    n, c, h, w = x.shape
    ho = (h + 2 * padding - kh) // stride + 1
    wo = (w + 2 * padding - kw) // stride + 1
    xp = jnp.pad(x, ((0, 0), (0, 0), (padding, padding), (padding, padding)))
    xp = xp.transpose(0, 2, 3, 1)                                 # N, Hp, Wp, C
    cols = [xp[:, i:i + stride * ho:stride, j:j + stride * wo:stride, :]
            for i in range(kh) for j in range(kw)]
    patches = jnp.concatenate(cols, axis=-1)                      # [N,Ho,Wo, kh*kw*C]
    return patches.reshape(n * ho * wo, kh * kw * c), ho, wo


def _vmem_budget_bytes():
    """~Half of physical VMEM (64 MiB fallback if hardware query unavailable)."""
    try:
        cap = int(pltpu.get_tpu_info().vmem_capacity_bytes)
    except Exception:  # e.g. interpret mode on CPU
        cap = 64 * 1024 * 1024
    return cap // 2


def _pick_tile_mp(mp, row_bytes, fixed_bytes, budget, align):
    """Largest multiple-of-`align` divisor of mp whose double-buffered per-step
    footprint (row_bytes per packed row + fixed_bytes) fits in ~60% of budget."""
    avail = max(int(0.6 * budget) - fixed_bytes, align * row_bytes)
    target = max(align, min(mp, avail // max(row_bytes, 1)))
    if mp <= target:
        return mp
    t = (target // align) * align
    while t >= align:
        if mp % t == 0:
            return t
        t -= align
    return mp


@functools.partial(jax.jit,
                   static_argnames=("stride", "padding", "tile_mp", "matmul_dtype"))
def conv_block_forward(x, weight, bias, gamma, beta, *, stride, padding,
                       tile_mp=None, matmul_dtype=jnp.float32):
    """x: [N,Cin,H,W]; weight: [Cout,Cin,kh,kw]; bias/gamma/beta: [Cout]."""
    n = x.shape[0]
    cout, _, kh, kw = weight.shape

    patches, ho, wo = _im2col(x, kh, kw, stride, padding)         # [M, K] f32
    m, k_dim = patches.shape

    op_dtype = jnp.dtype(matmul_dtype)
    align = 16 if op_dtype == jnp.dtype(jnp.bfloat16) else 8

    # Lane-dense packing: G consecutive output rows share one 128-lane row.
    g = _LANES // cout if (cout < _LANES and _LANES % cout == 0) else 1
    # Gate the kron(I_G, W) MXU blowup: only keep large G while K is small
    # (i.e. while the kernel is HBM-bound, not MXU-bound).
    while g > 1 and g * k_dim > 4096:
        g //= 2

    # Pad M so mp = m_pad // g is a multiple of `align`; pad rows are excluded
    # from the statistics and sliced off the output below.
    unit = g * align
    m_pad = ((m + unit - 1) // unit) * unit
    pad_rows = m_pad - m
    if pad_rows:
        patches = jnp.pad(patches, ((0, pad_rows), (0, 0)))
    mp, cp = m_pad // g, g * cout

    # Operands in the packed layout.
    w_mat = weight.transpose(2, 3, 1, 0).reshape(k_dim, cout)     # (kh,kw,Cin) x Cout
    w_bd = jnp.kron(jnp.eye(g, dtype=w_mat.dtype), w_mat)         # [G*K, G*Cout]
    patches_p = patches.reshape(mp, g * k_dim).astype(op_dtype)
    w_bd = w_bd.astype(op_dtype)
    bias_p = jnp.tile(bias.reshape(1, cout), (1, g)).astype(jnp.float32)

    # VMEM-aware tile selection (double-buffered patches + y per step).
    in_bytes = op_dtype.itemsize
    row_bytes = 2 * (g * k_dim) * in_bytes + 2 * cp * 4
    fixed_bytes = 2 * (g * k_dim * cp * in_bytes) + 2 * cp * 4 + 2 * (2 * cp * 4)
    budget = _vmem_budget_bytes()
    if tile_mp is None:
        tile_mp = _pick_tile_mp(mp, row_bytes, fixed_bytes, budget, align)
    if mp % tile_mp != 0 or (tile_mp != mp and tile_mp % align != 0):
        raise ValueError(f"invalid tile_mp={tile_mp} for mp={mp}, align={align}")
    num_tiles = mp // tile_mp

    # Megacore split of pass 1 (v7x has 2 TensorCores; harmless elsewhere).
    num_cores = 2 if (num_tiles % 2 == 0 and num_tiles >= 2) else 1
    tiles_per_core = num_tiles // num_cores
    row_idx = lambda c, i: (c * tiles_per_core + i, 0)

    # ---- Pass 1: conv matmul + per-lane, per-core batch statistics ----------
    y_dense, stats = pl.pallas_call(
        _conv_stats_kernel,
        out_shape=(jax.ShapeDtypeStruct((mp, cp), jnp.float32),
                   jax.ShapeDtypeStruct((2, num_cores * cp), jnp.float32)),
        grid=(num_cores, tiles_per_core),
        in_specs=[
            pl.BlockSpec((tile_mp, g * k_dim), row_idx),
            pl.BlockSpec((g * k_dim, cp), lambda c, i: (0, 0)),
            pl.BlockSpec((1, cp), lambda c, i: (0, 0)),
        ],
        out_specs=(
            pl.BlockSpec((tile_mp, cp), row_idx),
            pl.BlockSpec((2, cp), lambda c, i: (0, c)),   # per-core stats slab
        ),
        compiler_params=pltpu.CompilerParams(
            dimension_semantics=("parallel", "arbitrary"),
            vmem_limit_bytes=budget),
    )(patches_p, w_bd, bias_p)

    # Combine core partials and the G lane-copies of each channel; remove the
    # analytic pad-row contribution (each pad row contributes exactly bias and
    # bias^2); fold BN into scale/shift.  Divisor is the TRUE M = N*Ho*Wo.
    stats_c = stats.reshape(2, num_cores, g, cout).sum(axis=(1, 2))   # [2, Cout]
    if pad_rows:
        stats_c = stats_c - pad_rows * jnp.stack([bias, bias * bias], axis=0)
    mean = stats_c[0] / m
    var = jnp.maximum(stats_c[1] / m - mean * mean, 0.0)             # biased variance
    rstd = lax.rsqrt(var + BN_EPS)
    scale = gamma * rstd
    shift = beta - mean * scale
    params = jnp.stack([jnp.tile(scale, g), jnp.tile(shift, g)],
                       axis=0).astype(jnp.float32)                   # [2, G*Cout]

    # ---- Pass 2: BN affine + Mish (output aliases the y buffer) -------------
    out_dense = pl.pallas_call(
        _bn_mish_kernel,
        out_shape=jax.ShapeDtypeStruct((mp, cp), jnp.float32),
        grid=(num_tiles,),
        in_specs=[
            pl.BlockSpec((tile_mp, cp), lambda i: (i, 0)),
            pl.BlockSpec((2, cp), lambda i: (0, 0)),
        ],
        out_specs=pl.BlockSpec((tile_mp, cp), lambda i: (i, 0)),
        input_output_aliases={0: 0},
        compiler_params=pltpu.CompilerParams(
            dimension_semantics=("parallel",),
            vmem_limit_bytes=budget),
    )(y_dense, params)

    # Packed [MP, G*Cout] == row-major [M_pad, Cout]; drop pad rows, go NCHW.
    out_flat = out_dense.reshape(mp * g, cout)[:m]
    return out_flat.reshape(n, ho, wo, cout).transpose(0, 3, 1, 2)


# ---------------------------------------------------------------------------
# Pure-JAX reference (for the correctness check).
# ---------------------------------------------------------------------------
def conv_block_reference(x, weight, bias, gamma, beta, *, stride, padding):
    y = lax.conv_general_dilated(
        x, weight, window_strides=(stride, stride),
        padding=[(padding, padding), (padding, padding)],
        dimension_numbers=("NCHW", "OIHW", "NCHW"))
    y = y + bias.reshape(1, -1, 1, 1)
    mean = jnp.mean(y, axis=(0, 2, 3), keepdims=True)
    var = jnp.mean((y - mean) ** 2, axis=(0, 2, 3), keepdims=True)
    z = (y - mean) * lax.rsqrt(var + BN_EPS)
    z = z * gamma.reshape(1, -1, 1, 1) + beta.reshape(1, -1, 1, 1)
    sp = jnp.maximum(z, 0.0) + jnp.log1p(jnp.exp(-jnp.abs(z)))
    return z * jnp.tanh(sp)


if __name__ == "__main__":
    # Shapes consistent with Conv_Block(in=4, out=8, kernel=3, stride=1, pad=1).
    N, CIN, H, W = 2, 4, 16, 16
    COUT, KSIZE, STRIDE, PAD = 8, 3, 1, 1

    key = jax.random.PRNGKey(0)
    kx, kwt, kb = jax.random.split(key, 3)
    x = jax.random.normal(kx, (N, CIN, H, W), dtype=jnp.float32)
    fan_in = CIN * KSIZE * KSIZE
    bound = float(fan_in) ** -0.5
    weight = jax.random.uniform(kwt, (COUT, CIN, KSIZE, KSIZE),
                                minval=-bound, maxval=bound, dtype=jnp.float32)
    bias = jax.random.uniform(kb, (COUT,), minval=-bound, maxval=bound,
                              dtype=jnp.float32)
    gamma = jnp.ones((COUT,), jnp.float32)   # BatchNorm2d default weight
    beta = jnp.zeros((COUT,), jnp.float32)   # BatchNorm2d default bias

    ref = conv_block_reference(x, weight, bias, gamma, beta,
                               stride=STRIDE, padding=PAD)

    # (a) auto tile selection, f32 matmul operands (single tile at this size).
    out_auto = jax.block_until_ready(
        conv_block_forward(x, weight, bias, gamma, beta,
                           stride=STRIDE, padding=PAD))
    # (b) forced multi-tile: exercises the pipelined stats accumulator and the
    #     2-core grid split (grid = (2, 2)).
    out_tiled = jax.block_until_ready(
        conv_block_forward(x, weight, bias, gamma, beta,
                           stride=STRIDE, padding=PAD, tile_mp=8))
    # (c) bf16 matmul operands (halves pass-1 DMA; accumulation stays f32).
    out_bf16 = jax.block_until_ready(
        conv_block_forward(x, weight, bias, gamma, beta,
                           stride=STRIDE, padding=PAD, tile_mp=16,
                           matmul_dtype=jnp.bfloat16))

    for out in (out_auto, out_tiled, out_bf16):
        assert out.shape == (N, COUT, H, W), out.shape
    for out in (out_auto, out_tiled):
        assert jnp.allclose(out, ref, rtol=1e-3, atol=1e-3), \
            float(jnp.max(jnp.abs(out - ref)))
    # bf16 operand rounding dominates this path's error; BN re-normalizes.
    assert jnp.allclose(out_bf16, ref, rtol=5e-2, atol=5e-2), \
        float(jnp.max(jnp.abs(out_bf16 - ref)))

    print("KERNEL_OK")
</pallas_src>

<mosaic_0001>
module attributes {stable_mosaic.version = 11 : i64} {
  func.func @_conv_stats_kernel(%arg0: i32, %arg1: i32, %arg2: memref<32x576xf32, #tpu.memory_space<vmem>>, %arg3: memref<576x128xf32, #tpu.memory_space<vmem>>, %arg4: memref<1x128xf32, #tpu.memory_space<vmem>>, %arg5: memref<32x128xf32, #tpu.memory_space<vmem>>, %arg6: memref<2x128xf32, #tpu.memory_space<vmem>>) attributes {dimension_semantics = [#tpu.dimension_semantics<parallel>, #tpu.dimension_semantics<arbitrary>], iteration_bounds = array<i64: 1, 1>, scalar_prefetch = 0 : i64, scratch_operands = 0 : i64, tpu.core_type = #tpu.core_type<tc>, window_params = [{transform_indices = @transform_0, window_bounds = array<i64: 32, 576>}, {pipeline_mode = #tpu.pipeline_mode<synchronous>, transform_indices = @transform_1, window_bounds = array<i64: 576, 128>}, {pipeline_mode = #tpu.pipeline_mode<synchronous>, transform_indices = @transform_2, window_bounds = array<i64: 1, 128>}, {transform_indices = @transform_3, window_bounds = array<i64: 32, 128>}, {transform_indices = @transform_4, window_bounds = array<i64: 2, 128>}]} {
    %c0 = arith.constant 0 : index
    %c0_0 = arith.constant 0 : index
    %0 = vector.load %arg2[%c0, %c0_0] : memref<32x576xf32, #tpu.memory_space<vmem>>, vector<32x576xf32>
    %c0_1 = arith.constant 0 : index
    %c0_2 = arith.constant 0 : index
    %1 = vector.load %arg3[%c0_1, %c0_2] : memref<576x128xf32, #tpu.memory_space<vmem>>, vector<576x128xf32>
    %cst = arith.constant dense<0.000000e+00> : vector<32x128xf32>
    %2 = tpu.matmul %0, %1, %cst {dimension_numbers = #tpu.dot_dimension_numbers<[1], [0], [0], [1], [0, 0, 1, 1], [], []>} : vector<32x576xf32>, vector<576x128xf32>, vector<32x128xf32> -> vector<32x128xf32>
    %c0_3 = arith.constant 0 : index
    %c0_4 = arith.constant 0 : index
    %3 = vector.load %arg4[%c0_3, %c0_4] : memref<1x128xf32, #tpu.memory_space<vmem>>, vector<1x128xf32>
    %4 = vector.broadcast %3 : vector<1x128xf32> to vector<32x128xf32>
    %5 = arith.addf %2, %4 : vector<32x128xf32>
    %c0_5 = arith.constant 0 : index
    %c0_6 = arith.constant 0 : index
    %6 = vector.load %arg5[%c0_5, %c0_6] : memref<32x128xf32, #tpu.memory_space<vmem>>, vector<32x128xf32>
    tpu.vector_store %arg5[%c0_5, %c0_6], %5 {strides = array<i32>} : memref<32x128xf32, #tpu.memory_space<vmem>>, vector<32x128xf32>,
    %c0_i32 = arith.constant 0 : i32
    %7 = arith.cmpi eq, %arg1, %c0_i32 : i32
    %8 = arith.extui %7 : i1 to i32
    %c0_i32_7 = arith.constant 0 : i32
    %9 = arith.cmpi ne, %8, %c0_i32_7 : i32
    scf.if %9 {
      %cst_17 = arith.constant 0.000000e+00 : f32
      %21 = vector.broadcast %cst_17 : f32 to vector<2x128xf32>
      %c0_18 = arith.constant 0 : index
      %c0_19 = arith.constant 0 : index
      %22 = vector.load %arg6[%c0_18, %c0_19] : memref<2x128xf32, #tpu.memory_space<vmem>>, vector<2x128xf32>
      tpu.vector_store %arg6[%c0_18, %c0_19], %21 {strides = array<i32>} : memref<2x128xf32, #tpu.memory_space<vmem>>, vector<2x128xf32>,
    } else {
    }
    %c0_8 = arith.constant 0 : index
    %c0_9 = arith.constant 0 : index
    %10 = vector.load %arg6[%c0_8, %c0_9] : memref<2x128xf32, #tpu.memory_space<vmem>>, vector<1x128xf32>
    %cst_10 = arith.constant dense<0.000000e+00> : vector<128xf32>
    %11 = vector.multi_reduction <add>, %5, %cst_10 [0] : vector<32x128xf32> to vector<128xf32>
    %12 = vector.shape_cast %11 : vector<128xf32> to vector<1x128xf32>
    %13 = arith.addf %10, %12 : vector<1x128xf32>
    %c0_11 = arith.constant 0 : index
    %c0_12 = arith.constant 0 : index
    %14 = vector.load %arg6[%c0_11, %c0_12] : memref<2x128xf32, #tpu.memory_space<vmem>>, vector<1x128xf32>
    tpu.vector_store %arg6[%c0_11, %c0_12], %13 {strides = array<i32>} : memref<2x128xf32, #tpu.memory_space<vmem>>, vector<1x128xf32>,
    %c1 = arith.constant 1 : index
    %c0_13 = arith.constant 0 : index
    %15 = vector.load %arg6[%c1, %c0_13] : memref<2x128xf32, #tpu.memory_space<vmem>>, vector<1x128xf32>
    %16 = arith.mulf %5, %5 : vector<32x128xf32>
    %cst_14 = arith.constant dense<0.000000e+00> : vector<128xf32>
    %17 = vector.multi_reduction <add>, %16, %cst_14 [0] : vector<32x128xf32> to vector<128xf32>
    %18 = vector.shape_cast %17 : vector<128xf32> to vector<1x128xf32>
    %19 = arith.addf %15, %18 : vector<1x128xf32>
    %c1_15 = arith.constant 1 : index
    %c0_16 = arith.constant 0 : index
    %20 = vector.load %arg6[%c1_15, %c0_16] : memref<2x128xf32, #tpu.memory_space<vmem>>, vector<1x128xf32>
    tpu.vector_store %arg6[%c1_15, %c0_16], %19 {strides = array<i32>} : memref<2x128xf32, #tpu.memory_space<vmem>>, vector<1x128xf32>,
    return
  }
  func.func @transform_0(%arg0: i32, %arg1: i32) -> (i32, i32) {
    %c1_i32 = arith.constant 1 : i32
    %0 = arith.muli %arg0, %c1_i32 : i32
    %1 = arith.addi %0, %arg1 : i32
    %c0_i32 = arith.constant 0 : i32
    %c0_i32_0 = arith.constant 0 : i32
    return %1, %c0_i32 : i32, i32
  }
  func.func @transform_1(%arg0: i32, %arg1: i32) -> (i32, i32) {
    %c0_i32 = arith.constant 0 : i32
    %c0_i32_0 = arith.constant 0 : i32
    %c0_i32_1 = arith.constant 0 : i32
    return %c0_i32, %c0_i32_0 : i32, i32
  }
  func.func @transform_2(%arg0: i32, %arg1: i32) -> (i32, i32) {
    %c0_i32 = arith.constant 0 : i32
    %c0_i32_0 = arith.constant 0 : i32
    %c0_i32_1 = arith.constant 0 : i32
    return %c0_i32, %c0_i32_0 : i32, i32
  }
  func.func @transform_3(%arg0: i32, %arg1: i32) -> (i32, i32) {
    %c1_i32 = arith.constant 1 : i32
    %0 = arith.muli %arg0, %c1_i32 : i32
    %1 = arith.addi %0, %arg1 : i32
    %c0_i32 = arith.constant 0 : i32
    %c0_i32_0 = arith.constant 0 : i32
    return %1, %c0_i32 : i32, i32
  }
  func.func @transform_4(%arg0: i32, %arg1: i32) -> (i32, i32) {
    %c0_i32 = arith.constant 0 : i32
    %c0_i32_0 = arith.constant 0 : i32
    return %c0_i32, %arg0 : i32, i32
  }
}

module attributes {stable_mosaic.version = 11 : i64} {
  func.func @_bn_mish_kernel(%arg0: i32, %arg1: memref<32x128xf32, #tpu.memory_space<vmem>>, %arg2: memref<2x128xf32, #tpu.memory_space<vmem>>, %arg3: memref<32x128xf32, #tpu.memory_space<vmem>>) attributes {dimension_semantics = [#tpu.dimension_semantics<parallel>], iteration_bounds = array<i64: 1>, scalar_prefetch = 0 : i64, scratch_operands = 0 : i64, tpu.core_type = #tpu.core_type<tc>, window_params = [{transform_indices = @transform_0, window_bounds = array<i64: 32, 128>}, {pipeline_mode = #tpu.pipeline_mode<synchronous>, transform_indices = @transform_1, window_bounds = array<i64: 2, 128>}, {transform_indices = @transform_2, window_bounds = array<i64: 32, 128>}]} {
    %c0 = arith.constant 0 : index
    %c0_0 = arith.constant 0 : index
    %0 = vector.load %arg1[%c0, %c0_0] : memref<32x128xf32, #tpu.memory_space<vmem>>, vector<32x128xf32>
    %c0_1 = arith.constant 0 : index
    %c0_2 = arith.constant 0 : index
    %1 = vector.load %arg2[%c0_1, %c0_2] : memref<2x128xf32, #tpu.memory_space<vmem>>, vector<1x128xf32>
    %2 = vector.broadcast %1 : vector<1x128xf32> to vector<32x128xf32>
    %3 = arith.mulf %0, %2 : vector<32x128xf32>
    %c1 = arith.constant 1 : index
    %c0_3 = arith.constant 0 : index
    %4 = vector.load %arg2[%c1, %c0_3] : memref<2x128xf32, #tpu.memory_space<vmem>>, vector<1x128xf32>
    %5 = vector.broadcast %4 : vector<1x128xf32> to vector<32x128xf32>
    %6 = arith.addf %3, %5 : vector<32x128xf32>
    %7 = math.absf %6 : vector<32x128xf32>
    %cst = arith.constant 0.000000e+00 : f32
    %8 = vector.broadcast %cst : f32 to vector<32x128xf32>
    %9 = arith.subf %8, %7 : vector<32x128xf32>
    %10 = math.exp %9 : vector<32x128xf32>
    %cst_4 = arith.constant 0.000000e+00 : f32
    %11 = vector.broadcast %cst_4 : f32 to vector<32x128xf32>
    %12 = arith.cmpf oge, %6, %11 : vector<32x128xf32>
    %cst_5 = arith.constant 1.000000e+00 : f32
    %13 = vector.broadcast %cst_5 : f32 to vector<32x128xf32>
    %14 = arith.select %12, %10, %13 : vector<32x128xi1>, vector<32x128xf32>
    %cst_6 = arith.constant 1.000000e+00 : f32
    %15 = vector.broadcast %cst_6 : f32 to vector<32x128xf32>
    %16 = arith.addf %15, %10 : vector<32x128xf32>
    %17 = arith.mulf %16, %16 : vector<32x128xf32>
    %18 = arith.mulf %14, %14 : vector<32x128xf32>
    %19 = arith.subf %17, %18 : vector<32x128xf32>
    %20 = arith.addf %17, %18 : vector<32x128xf32>
    %21 = arith.divf %19, %20 : vector<32x128xf32>
    %22 = arith.mulf %6, %21 : vector<32x128xf32>
    %c0_7 = arith.constant 0 : index
    %c0_8 = arith.constant 0 : index
    %23 = vector.load %arg3[%c0_7, %c0_8] : memref<32x128xf32, #tpu.memory_space<vmem>>, vector<32x128xf32>
    tpu.vector_store %arg3[%c0_7, %c0_8], %22 {strides = array<i32>} : memref<32x128xf32, #tpu.memory_space<vmem>>, vector<32x128xf32>,
    return
  }
  func.func @transform_0(%arg0: i32) -> (i32, i32) {
    %c0_i32 = arith.constant 0 : i32
    %c0_i32_0 = arith.constant 0 : i32
    return %arg0, %c0_i32 : i32, i32
  }
  func.func @transform_1(%arg0: i32) -> (i32, i32) {
    %c0_i32 = arith.constant 0 : i32
    %c0_i32_0 = arith.constant 0 : i32
    %c0_i32_1 = arith.constant 0 : i32
    return %c0_i32, %c0_i32_0 : i32, i32
  }
  func.func @transform_2(%arg0: i32) -> (i32, i32) {
    %c0_i32 = arith.constant 0 : i32
    %c0_i32_0 = arith.constant 0 : i32
    return %arg0, %c0_i32 : i32, i32
  }
}

</mosaic_0001>

<bundles_post_ra>
// kernel: mul.4
= control target key start
LH: loop header
LB: loop body
LE: loop exit
PB: predicated region body
PF: predicated region fallthrough
CT: control target
= control target key end

     0   :  { %vm46_vm0 = vcmask 64512   ;;  %s184_s0 = inlined_call_operand.vmem [shape: f32[3,3,4,8], index: 0, kind: input, shape index: {}]   ;;  %s185_s1 = inlined_call_operand.vmem [shape: f32[36,8], index: 1, kind: output, shape index: {}]  }
   0x1   :  { %v95_v0 = vld [vmem:[%s184_s0 + $0x20] sm:$0xf]  ;;  %v96_v1 = vld [vmem:[%s184_s0 + $0x1c] sm:$0xf]  ;;  %v97_v2 = vld [vmem:[%s184_s0 + $0x18] sm:$0xf] }
   0x2   :  { %8 = vst [vmem:[#allocation0 + $0x40] sm:$0xf] %v95_v0  ;;  %13 = vst [vmem:[#allocation0 + $0x38] sm:$0xf] %v96_v1  ;;  %v98_v3 = vld [vmem:[%s184_s0 + $0x14] sm:$0xf] }
   0x3   :  { %18 = vst [vmem:[#allocation0 + $0x30] sm:$0xf] %v97_v2  ;;  %v99_v4 = vld [vmem:[%s184_s0 + $0x10] sm:$0xf]  ;;  %v100_v5 = vld [vmem:[%s184_s0 + $0xc] sm:$0xf] }
   0x4   :  { %23 = vst [vmem:[#allocation0 + $0x28] sm:$0xf] %v98_v3  ;;  %28 = vst [vmem:[#allocation0 + $0x20] sm:$0xf] %v99_v4  ;;  %v101_v6 = vld [vmem:[%s184_s0 + $0x8] sm:$0xf] }
   0x5   :  { %33 = vst [vmem:[#allocation0 + $0x18] sm:$0xf] %v100_v5  ;;  %v102_v7 = vld [vmem:[%s184_s0 + $0x4] sm:$0xf]  ;;  %v43_v8 = vld [vmem:[%s184_s0] sm:$0xf] }
   0x6   :  { %38 = vst [vmem:[#allocation0 + $0x10] sm:$0xf] %v101_v6  ;;  %42 = vst [vmem:[#allocation0 + $0x8] sm:$0xf] %v102_v7 }
   0x7   :  { %44 = vst [vmem:[#allocation0] sm:$0xf] %v43_v8 }
   0x9   :  { %v79_v10 = vld [vmem:[#allocation0 + $0x38] sm:$0xf]   ;;  %v84_v11 = vld [vmem:[#allocation0 + $0x40] sm:$0xf]  }
   0xa   :  { %v74_v9 = vld [vmem:[#allocation0 + $0x30] sm:$0xf]   ;;  %109 = vst.msk [vmem:[%s185_s1 + $0x1c] sm:$0xf] %vm46_vm0, %v79_v10   ;;  %110 = vst.msk [vmem:[%s185_s1 + $0x20] sm:$0xf] %vm46_vm0, %v84_v11  }
   0xb   :  { %v64_v13 = vld [vmem:[#allocation0 + $0x20] sm:$0xf]   ;;  %v69_v14 = vld [vmem:[#allocation0 + $0x28] sm:$0xf]   ;;  %108 = vst.msk [vmem:[%s185_s1 + $0x18] sm:$0xf] %vm46_vm0, %v74_v9  }
   0xc   :  { %v59_v12 = vld [vmem:[#allocation0 + $0x18] sm:$0xf]   ;;  %106 = vst.msk [vmem:[%s185_s1 + $0x10] sm:$0xf] %vm46_vm0, %v64_v13   ;;  %107 = vst.msk [vmem:[%s185_s1 + $0x14] sm:$0xf] %vm46_vm0, %v69_v14  }
   0xd   :  { %v49_v16 = vld [vmem:[#allocation0 + $0x8] sm:$0xf]   ;;  %v54_v17 = vld [vmem:[#allocation0 + $0x10] sm:$0xf]   ;;  %105 = vst.msk [vmem:[%s185_s1 + $0xc] sm:$0xf] %vm46_vm0, %v59_v12  }
   0xe   :  { %v45_v15 = vld [vmem:[#allocation0] sm:$0xf]   ;;  %103 = vst.msk [vmem:[%s185_s1 + $0x4] sm:$0xf] %vm46_vm0, %v49_v16   ;;  %104 = vst.msk [vmem:[%s185_s1 + $0x8] sm:$0xf] %vm46_vm0, %v54_v17  }
   0xf   :  { %47 = vst.msk [vmem:[%s185_s1] sm:$0xf] %vm46_vm0, %v45_v15  }

// kernel: conv_block_forward.3
= control target key start
LH: loop header
LB: loop body
LE: loop exit
PB: predicated region body
PF: predicated region fallthrough
CT: control target
= control target key end

     0   :  { %s180_s0 = inlined_call_operand.vmem [shape: f32[32,128], index: 0, kind: input, shape index: {}, may-alias: {0,2}]   ;;  %s181_s1 = inlined_call_operand.vmem [shape: f32[2,128], index: 1, kind: input, shape index: {}]   ;;  %s182_s2 = inlined_call_operand.vmem [shape: f32[32,128], index: 2, kind: output, shape index: {}, may-alias: {0,2}]  }
   0x1   :  { %v11_v0 = vld [vmem:[%s180_s0] sm:$0xff]  ;;  %v12_v4 = vld [vmem:[%s180_s0 + $0x8] sm:$0xff]  ;;  %v13_v5 = vld [vmem:[%s180_s0 + $0x10] sm:$0xff] }
   0x2   :  { %v97_v1 = vld [vmem:[%s181_s1] ss:$0 sm:$0xff]  ;;  %v98_v2 = vld [vmem:[%s181_s1 + $0x1] ss:$0 sm:$0xff]  ;;  %v14_v6 = vld [vmem:[%s180_s0 + $0x18] sm:$0xff] }
   0x3   :  { %v20_v3 = vmul.f32 %v97_v1, %v11_v0  ;;  %v21_v7 = vmul.f32 %v97_v1, %v12_v4  ;;  %v22_v8 = vmul.f32 %v97_v1, %v13_v5  ;;  %v23_v9 = vmul.f32 %v97_v1, %v14_v6 }
   0x5   :  { %v148_v10 = vadd.f32 %v98_v2, %v20_v3  ;;  %v150_v11 = vadd.f32 %v98_v2, %v21_v7  ;;  %v152_v12 = vadd.f32 %v98_v2, %v22_v8  ;;  %v154_v13 = vadd.f32 %v98_v2, %v23_v9 }
   0x7   :  { %v33_v14 = vand.u32 2147483647, %v148_v10  ;;  %v34_v15 = vand.u32 2147483647, %v150_v11  ;;  %v35_v16 = vand.u32 2147483647, %v152_v12 }
   0x8   :  { %v36_v18 = vand.u32 2147483647, %v154_v13  ;;  %vm49_vm0 = vcmp.ge.f32.partialorder %v148_v10, 0.0  ;;  %vm50_vm1 = vcmp.ge.f32.partialorder %v150_v11, 0.0  ;;  %vm51_vm2 = vcmp.ge.f32.partialorder %v152_v12, 0.0 }
   0x9   :  { %v37_v17 = vsub.f32 0.0, %v33_v14  ;;  %v38_v19 = vsub.f32 0.0, %v34_v15  ;;  %v39_v20 = vsub.f32 0.0, %v35_v16  ;;  %vm52_vm3 = vcmp.ge.f32.partialorder %v154_v13, 0.0 }
   0xa   :  { %v40_v22 = vsub.f32 0.0, %v36_v18 }
   0xb   :  { %v41_v21 = vmul.f32 1.442695, %v37_v17  ;;  %v43_v23 = vmul.f32 1.442695, %v38_v19  ;;  %v45_v24 = vmul.f32 1.442695, %v39_v20 }
   0xc   :  { %v47_v25 = vmul.f32 1.442695, %v40_v22 }
   0xd   :  { %99 = vpow2.f32 %v41_v21 }
   0xe   :  { %101 = vpow2.f32 %v43_v23 }
   0xf   :  { %103 = vpow2.f32 %v45_v24 }
  0x10   :  { %105 = vpow2.f32 %v47_v25 }
  0x17   :  { %v100_v26 = vpop.eup %99 }
  0x18   :  { %v102_v27 = vpop.eup %101  ;;  %v53_v28 = vsel %vm49_vm0, %v100_v26, 1.0  ;;  %v57_v29 = vadd.f32 1.0, %v100_v26 }
  0x19   :  { %v104_v30 = vpop.eup %103  ;;  %v65_v31 = vmul.f32 %v53_v28, %v53_v28  ;;  %v54_v32 = vsel %vm50_vm1, %v102_v27, 1.0  ;;  %v58_v33 = vadd.f32 1.0, %v102_v27 }
  0x1a   :  { %v106_v34 = vpop.eup %105  ;;  %v61_v35 = vmul.f32 %v57_v29, %v57_v29  ;;  %v66_v36 = vmul.f32 %v54_v32, %v54_v32  ;;  %v55_v37 = vsel %vm51_vm2, %v104_v30, 1.0  ;;  %v59_v38 = vadd.f32 1.0, %v104_v30 }
  0x1b   :  { %v62_v39 = vmul.f32 %v58_v33, %v58_v33  ;;  %v67_v40 = vmul.f32 %v55_v37, %v55_v37  ;;  %v56_v41 = vsel %vm52_vm3, %v106_v34, 1.0  ;;  %v60_v42 = vadd.f32 1.0, %v106_v34 }
  0x1c   :  { %v73_v43 = vadd.f32 %v65_v31, %v61_v35  ;;  %v63_v44 = vmul.f32 %v59_v38, %v59_v38  ;;  %v68_v45 = vmul.f32 %v56_v41, %v56_v41  ;;  %v69_v50 = vsub.f32 %v61_v35, %v65_v31 }
  0x1d   :  { %v74_v46 = vadd.f32 %v66_v36, %v62_v39  ;;  %v64_v47 = vmul.f32 %v60_v42, %v60_v42  ;;  %v70_v51 = vsub.f32 %v62_v39, %v66_v36 }
  0x1e   :  { %107 = vrcp.f32 %v73_v43  ;;  %v75_v48 = vadd.f32 %v67_v40, %v63_v44  ;;  %v71_v52 = vsub.f32 %v63_v44, %v67_v40 }
  0x1f   :  { %109 = vrcp.f32 %v74_v46  ;;  %v76_v49 = vadd.f32 %v68_v45, %v64_v47  ;;  %v72_v54 = vsub.f32 %v64_v47, %v68_v45 }
  0x20   :  { %111 = vrcp.f32 %v75_v48 }
  0x21   :  { %113 = vrcp.f32 %v76_v49 }
  0x28   :  { %v108_v53 = vpop.eup %107 }
  0x29   :  { %v110_v55 = vpop.eup %109  ;;  %v78_v56 = vmul.f32 %v108_v53, %v69_v50 }
  0x2a   :  { %v112_v57 = vpop.eup %111  ;;  %v80_v58 = vmul.f32 %v110_v55, %v70_v51 }
  0x2b   :  { %v114_v59 = vpop.eup %113  ;;  %v85_v60 = vmul.f32 %v78_v56, %v148_v10  ;;  %v82_v61 = vmul.f32 %v112_v57, %v71_v52 }
  0x2c   :  { %v86_v62 = vmul.f32 %v80_v58, %v150_v11  ;;  %v84_v63 = vmul.f32 %v114_v59, %v72_v54 }
  0x2d   :  { %89 = vst [vmem:[%s182_s2] sm:$0xff] %v85_v60  ;;  %v87_v0 = vmul.f32 %v82_v61, %v152_v12 }
  0x2e   :  { %90 = vst [vmem:[%s182_s2 + $0x8] sm:$0xff] %v86_v62  ;;  %v88_v1 = vmul.f32 %v84_v63, %v154_v13 }
  0x2f   :  { %91 = vst [vmem:[%s182_s2 + $0x10] sm:$0xff] %v87_v0 }
  0x30   :  { %92 = vst [vmem:[%s182_s2 + $0x18] sm:$0xff] %v88_v1 }

// kernel: conv_block_forward.2
= control target key start
LH: loop header
LB: loop body
LE: loop exit
PB: predicated region body
PF: predicated region fallthrough
CT: control target
= control target key end

     0   :  { %vm154_vm0 = vcmask 523264   ;;  %s1043_s1 = inlined_call_operand.vmem [shape: f32[576,128], index: 1, kind: input, shape index: {}]   ;;  %s1044_s0 = inlined_call_operand.vmem [shape: f32[32,576], index: 0, kind: input, shape index: {}]   ;;  %s1045_s4 = inlined_call_operand.vmem [shape: f32[2,128], index: 4, kind: output, shape index: {1}]   ;;  %s1046_s2 = inlined_call_operand.vmem [shape: f32[1,128], index: 2, kind: input, shape index: {}]   ;;  %s1047_s3 = inlined_call_operand.vmem [shape: f32[32,128], index: 3, kind: output, shape index: {0}]  }
   0x1   :  { %v91_v0 = vld [vmem:[%s1043_s1 + $0x80] sm:$0xff]  ;;  %v92_v1 = vld [vmem:[%s1043_s1 + $0x88] sm:$0xff]  ;;  %v93_v11 = vld [vmem:[%s1043_s1 + $0x90] sm:$0xff] }
   0x2   :  { %v123_v2 = vld [vmem:[%s1043_s1 + $0x180] sm:$0xff]  ;;  %v622_v3 = vpack.c.bf16 %v92_v1, %v91_v0  ;;  %v124_v4 = vld [vmem:[%s1043_s1 + $0x188] sm:$0xff]  ;;  %v94_v13 = vld [vmem:[%s1043_s1 + $0x98] sm:$0xff] }
   0x3   :  { %v75_v5 = vld [vmem:[%s1043_s1] sm:$0xff]  ;;  %v76_v6 = vld [vmem:[%s1043_s1 + $0x8] sm:$0xff]  ;;  %v654_v7 = vpack.c.bf16 %v124_v4, %v123_v2  ;;  %v125_v14 = vld [vmem:[%s1043_s1 + $0x190] sm:$0xff]  ;;  %v626_v16 = vpack.c.bf16 %v94_v13, %v93_v11 }
   0x4   :  { %v624_v8 = vpack.c.bf16 %v76_v6, %v75_v5  ;;  %v107_v9 = vld [vmem:[%s1043_s1 + $0x100] sm:$0xff]  ;;  %v108_v10 = vld [vmem:[%s1043_s1 + $0x108] sm:$0xff]  ;;  %623 = vmatprep.subr.bf16.mxu0 %v622_v3  ;;  %v126_v15 = vld [vmem:[%s1043_s1 + $0x198] sm:$0xff] }
   0x5   :  { %v656_v12 = vpack.c.bf16 %v108_v10, %v107_v9  ;;  %655 = vmatprep.subr.bf16.mxu1 %v654_v7  ;;  %v658_v17 = vpack.c.bf16 %v126_v15, %v125_v14  ;;  %v77_v18 = vld [vmem:[%s1043_s1 + $0x10] sm:$0xff]  ;;  %v78_v19 = vld [vmem:[%s1043_s1 + $0x18] sm:$0xff]  ;;  %v95_v23 = vld [vmem:[%s1043_s1 + $0xa0] sm:$0xff] }
   0x6   :  { %625 = vmatpush3.bf16.msra.mxu0 %v624_v8  ;;  %v109_v20 = vld [vmem:[%s1043_s1 + $0x110] sm:$0xff]  ;;  %v628_v21 = vpack.c.bf16 %v78_v19, %v77_v18  ;;  %v110_v22 = vld [vmem:[%s1043_s1 + $0x118] sm:$0xff]  ;;  %v96_v24 = vld [vmem:[%s1043_s1 + $0xa8] sm:$0xff] }
   0x7   :  { %657 = vmatpush3.bf16.msra.mxu1 %v656_v12  ;;  %627 = vmatprep.subr.bf16.mxu0 %v626_v16  ;;  %v660_v25 = vpack.c.bf16 %v110_v22, %v109_v20  ;;  %v630_v26 = vpack.c.bf16 %v96_v24, %v95_v23  ;;  %v127_v27 = vld [vmem:[%s1043_s1 + $0x1a0] sm:$0xff]  ;;  %v128_v28 = vld [vmem:[%s1043_s1 + $0x1a8] sm:$0xff]  ;;  %v97_v35 = vld [vmem:[%s1043_s1 + $0xb0] sm:$0xff] }
   0x8   :  { %659 = vmatprep.subr.bf16.mxu1 %v658_v17  ;;  %v79_v29 = vld [vmem:[%s1043_s1 + $0x20] sm:$0xff]  ;;  %v662_v30 = vpack.c.bf16 %v128_v28, %v127_v27  ;;  %v80_v31 = vld [vmem:[%s1043_s1 + $0x28] sm:$0xff]  ;;  %v98_v36 = vld [vmem:[%s1043_s1 + $0xb8] sm:$0xff] }
   0x9   :  { %v111_v32 = vld [vmem:[%s1043_s1 + $0x120] sm:$0xff]  ;;  %v112_v33 = vld [vmem:[%s1043_s1 + $0x128] sm:$0xff]  ;;  %v632_v34 = vpack.c.bf16 %v80_v31, %v79_v29  ;;  %v129_v37 = vld [vmem:[%s1043_s1 + $0x1b0] sm:$0xff]  ;;  %v634_v39 = vpack.c.bf16 %v98_v36, %v97_v35 }
   0xa   :  { %629 = vmatpush3.bf16.msra.mxu0 %v628_v21  ;;  %v664_v38 = vpack.c.bf16 %v112_v33, %v111_v32  ;;  %v130_v40 = vld [vmem:[%s1043_s1 + $0x1b8] sm:$0xff]  ;;  %v81_v41 = vld [vmem:[%s1043_s1 + $0x30] sm:$0xff]  ;;  %v99_v46 = vld [vmem:[%s1043_s1 + $0xc0] sm:$0xff] }
   0xb   :  { %661 = vmatpush3.bf16.msra.mxu1 %v660_v25  ;;  %631 = vmatprep.subr.bf16.mxu0 %v630_v26  ;;  %v82_v42 = vld [vmem:[%s1043_s1 + $0x38] sm:$0xff]  ;;  %v666_v43 = vpack.c.bf16 %v130_v40, %v129_v37  ;;  %v113_v44 = vld [vmem:[%s1043_s1 + $0x130] sm:$0xff]  ;;  %v100_v47 = vld [vmem:[%s1043_s1 + $0xc8] sm:$0xff] }
   0xc   :  { %663 = vmatprep.subr.bf16.mxu1 %v662_v30  ;;  %v114_v45 = vld [vmem:[%s1043_s1 + $0x138] sm:$0xff]  ;;  %v131_v48 = vld [vmem:[%s1043_s1 + $0x1c0] sm:$0xff]  ;;  %v132_v49 = vld [vmem:[%s1043_s1 + $0x1c8] sm:$0xff]  ;;  %v636_v50 = vpack.c.bf16 %v82_v42, %v81_v41  ;;  %v638_v52 = vpack.c.bf16 %v100_v47, %v99_v46 }
   0xd   :  { %v668_v51 = vpack.c.bf16 %v114_v45, %v113_v44  ;;  %v83_v53 = vld [vmem:[%s1043_s1 + $0x40] sm:$0xff]  ;;  %v84_v54 = vld [vmem:[%s1043_s1 + $0x48] sm:$0xff]  ;;  %v670_v56 = vpack.c.bf16 %v132_v49, %v131_v48  ;;  %v101_v58 = vld [vmem:[%s1043_s1 + $0xd0] sm:$0xff] }
   0xe   :  { %633 = vmatpush3.bf16.msra.mxu0 %v632_v34  ;;  %v115_v55 = vld [vmem:[%s1043_s1 + $0x140] sm:$0xff]  ;;  %v116_v57 = vld [vmem:[%s1043_s1 + $0x148] sm:$0xff]  ;;  %v102_v59 = vld [vmem:[%s1043_s1 + $0xd8] sm:$0xff]  ;;  %v640_v62 = vpack.c.bf16 %v84_v54, %v83_v53 }
   0xf   :  { %665 = vmatpush3.bf16.msra.mxu1 %v664_v38  ;;  %635 = vmatprep.subr.bf16.mxu0 %v634_v39  ;;  %v133_v60 = vld [vmem:[%s1043_s1 + $0x1d0] sm:$0xff]  ;;  %v134_v61 = vld [vmem:[%s1043_s1 + $0x1d8] sm:$0xff]  ;;  %v672_v63 = vpack.c.bf16 %v116_v57, %v115_v55  ;;  %v642_v0 = vpack.c.bf16 %v102_v59, %v101_v58  ;;  %v103_v6 = vld [vmem:[%s1043_s1 + $0xe0] sm:$0xff] }
  0x10   :  { %667 = vmatprep.subr.bf16.mxu1 %v666_v43  ;;  %v85_v1 = vld [vmem:[%s1043_s1 + $0x50] sm:$0xff]  ;;  %v86_v2 = vld [vmem:[%s1043_s1 + $0x58] sm:$0xff]  ;;  %v674_v4 = vpack.c.bf16 %v134_v61, %v133_v60  ;;  %v104_v7 = vld [vmem:[%s1043_s1 + $0xe8] sm:$0xff] }
  0x11   :  { %v117_v3 = vld [vmem:[%s1043_s1 + $0x150] sm:$0xff]  ;;  %v118_v5 = vld [vmem:[%s1043_s1 + $0x158] sm:$0xff]  ;;  %v135_v8 = vld [vmem:[%s1043_s1 + $0x1e0] sm:$0xff]  ;;  %v644_v10 = vpack.c.bf16 %v86_v2, %v85_v1  ;;  %v646_v14 = vpack.c.bf16 %v104_v7, %v103_v6 }
  0x12   :  { %637 = vmatpush3.bf16.msra.mxu0 %v636_v50  ;;  %v136_v9 = vld [vmem:[%s1043_s1 + $0x1e8] sm:$0xff]  ;;  %v87_v11 = vld [vmem:[%s1043_s1 + $0x60] sm:$0xff]  ;;  %v676_v13 = vpack.c.bf16 %v118_v5, %v117_v3  ;;  %v58_v17 = vld [vmem:[%s1044_s0 + $0x18] sm:$0xff] }
  0x13   :  { %669 = vmatpush3.bf16.msra.mxu1 %v668_v51  ;;  %639 = vmatprep.subr.bf16.mxu0 %v638_v52  ;;  %v88_v12 = vld [vmem:[%s1043_s1 + $0x68] sm:$0xff]  ;;  %v119_v15 = vld [vmem:[%s1043_s1 + $0x160] sm:$0xff]  ;;  %v678_v18 = vpack.c.bf16 %v136_v9, %v135_v8  ;;  %v105_v20 = vld [vmem:[%s1043_s1 + $0xf0] sm:$0xff] }
  0x14   :  { %671 = vmatprep.subr.bf16.mxu1 %v670_v56  ;;  %v56_v16 = vld [vmem:[%s1044_s0 + $0x8] sm:$0xff]  ;;  %v106_v21 = vld [vmem:[%s1043_s1 + $0xf8] sm:$0xff]  ;;  %v137_v22 = vld [vmem:[%s1043_s1 + $0x1f0] sm:$0xff]  ;;  %316 = vmatprep.mubr.f32.mxu1 %v58_v17  ;;  %v648_v24 = vpack.c.bf16 %v88_v12, %v87_v11 }
  0x15   :  { %v120_v19 = vld [vmem:[%s1043_s1 + $0x168] sm:$0xff]  ;;  %231 = vmatprep.mubr.f32.mxu0 %v56_v16  ;;  %v138_v23 = vld [vmem:[%s1043_s1 + $0x1f8] sm:$0xff]  ;;  %v650_v26 = vpack.c.bf16 %v106_v21, %v105_v20  ;;  %v89_v27 = vld [vmem:[%s1043_s1 + $0x70] sm:$0xff] }
  0x16   :  { %641 = vmatpush3.bf16.msra.mxu0 %v640_v62  ;;  %v680_v25 = vpack.c.bf16 %v120_v19, %v119_v15  ;;  %v90_v28 = vld [vmem:[%s1043_s1 + $0x78] sm:$0xff]  ;;  %v121_v29 = vld [vmem:[%s1043_s1 + $0x170] sm:$0xff]  ;;  %v682_v30 = vpack.c.bf16 %v138_v23, %v137_v22  ;;  %v139_v32 = vld [vmem:[%s1043_s1 + $0x200] sm:$0xff] }
  0x17   :  { %673 = vmatpush3.bf16.msra.mxu1 %v672_v63  ;;  %643 = vmatprep.subr.bf16.mxu0 %v642_v0  ;;  %v122_v31 = vld [vmem:[%s1043_s1 + $0x178] sm:$0xff]  ;;  %v140_v33 = vld [vmem:[%s1043_s1 + $0x208] sm:$0xff]  ;;  %v652_v34 = vpack.c.bf16 %v90_v28, %v89_v27  ;;  %v141_v37 = vld [vmem:[%s1043_s1 + $0x210] sm:$0xff]  ;;  %v711_v0 = vmov 0.0  }
  0x18   :  { %675 = vmatprep.subr.bf16.mxu1 %v674_v4  ;;  %v684_v35 = vpack.c.bf16 %v122_v31, %v121_v29  ;;  %v686_v36 = vpack.c.bf16 %v140_v33, %v139_v32  ;;  %v142_v38 = vld [vmem:[%s1043_s1 + $0x218] sm:$0xff]  ;;  %v55_v39 = vld [vmem:[%s1044_s0] sm:$0xff]  ;;  %v57_v40 = vld [vmem:[%s1044_s0 + $0x10] sm:$0xff]  ;;  %430 = vst [vmem:[%s1045_s4] sm:$0x3] %v711_v0 }
  0x19   :  { %v61_v41 = vld [vmem:[%s1044_s0 + $0x30] sm:$0xff]  ;;  %v690_v42 = vpack.c.bf16 %v142_v38, %v141_v37  ;;  %v63_v43 = vld [vmem:[%s1044_s0 + $0x40] sm:$0xff]  ;;  %v144_v45 = vld [vmem:[%s1043_s1 + $0x228] sm:$0xff] }
  0x1a   :  { %645 = vmatpush3.bf16.msra.mxu0 %v644_v10  ;;  %v143_v44 = vld [vmem:[%s1043_s1 + $0x220] sm:$0xff]  ;;  %v60_v46 = vld [vmem:[%s1044_s0 + $0x28] sm:$0xff]  ;;  %v62_v47 = vld [vmem:[%s1044_s0 + $0x38] sm:$0xff] }
  0x1b   :  { %677 = vmatpush3.bf16.msra.mxu1 %v676_v13  ;;  %647 = vmatprep.subr.bf16.mxu0 %v646_v14  ;;  %v66_v48 = vld [vmem:[%s1044_s0 + $0x58] sm:$0xff]  ;;  %v694_v49 = vpack.c.bf16 %v144_v45, %v143_v44  ;;  %v68_v50 = vld [vmem:[%s1044_s0 + $0x68] sm:$0xff]  ;;  %v145_v51 = vld [vmem:[%s1043_s1 + $0x230] sm:$0xff] }
  0x1c   :  { %679 = vmatprep.subr.bf16.mxu1 %v678_v18  ;;  %v146_v52 = vld [vmem:[%s1043_s1 + $0x238] sm:$0xff]  ;;  %v65_v53 = vld [vmem:[%s1044_s0 + $0x50] sm:$0xff]  ;;  %v67_v54 = vld [vmem:[%s1044_s0 + $0x60] sm:$0xff] }
  0x1d   :  { %v71_v55 = vld [vmem:[%s1044_s0 + $0x80] sm:$0xff]  ;;  %v698_v56 = vpack.c.bf16 %v146_v52, %v145_v51  ;;  %v73_v57 = vld [vmem:[%s1044_s0 + $0x90] sm:$0xff]  ;;  %v70_v58 = vld [vmem:[%s1044_s0 + $0x78] sm:$0xff] }
  0x1e   :  { %649 = vmatpush3.bf16.msra.mxu0 %v648_v24  ;;  %v72_v59 = vld [vmem:[%s1044_s0 + $0x88] sm:$0xff]  ;;  %v59_v60 = vld [vmem:[%s1044_s0 + $0x20] sm:$0xff]  ;;  %v69_v61 = vld [vmem:[%s1044_s0 + $0x70] sm:$0xff] }
  0x1f   :  { %681 = vmatpush3.bf16.msra.mxu1 %v680_v25  ;;  %651 = vmatprep.subr.bf16.mxu0 %v650_v26  ;;  %v64_v62 = vld [vmem:[%s1044_s0 + $0x48] sm:$0xff]  ;;  %v74_v63 = vld [vmem:[%s1044_s0 + $0x98] sm:$0xff]  ;;  %v495_v2 = vld [vmem:[%s1046_s2] ss:$0 sm:$0xff] }
  0x20   :  { %683 = vmatprep.subr.bf16.mxu1 %v682_v30  ;;  %v443_v0 = vld [vmem:[%s1045_s4 + $0x1] sm:$0x1] }
  0x22   :  { %653 = vmatpush3.bf16.msra.mxu0 %v652_v34 }
  0x23   :  { %685 = vmatpush3.bf16.msra.mxu1 %v684_v35  ;;  %687 = vmatprep.subr.bf16.mxu0 %v686_v36 }
  0x24   :  { %702 = vmatprep.subr.bf16.mxu1 %v686_v36 }
  0x25   :  { %232 = vmatmul.mubr.f32.vlgmr.msra.gmra.mrb[0].mxu0 %v55_v39 }
  0x26   :  { %317 = vmatmul.mubr.f32.vlgmr.msra.gmra.mrb[0].mxu1 %v57_v40  ;;  %689 = vmatpush3.bf16.msra.mxu0 %v686_v36 }
  0x27   :  { %706 = vmatpush3.bf16.msra.mxu1 %v686_v36  ;;  %236 = vmatprep.mubr.f32.mxu0 %v61_v41 }
  0x28   :  { %321 = vmatprep.mubr.f32.mxu1 %v63_v43  ;;  %691 = vmatprep.subr.bf16.mxu0 %v690_v42 }
  0x29   :  { %237 = vmatmul.mubr.f32.gmra.mrb[2].mxu0 %v60_v46  ;;  %703 = vmatprep.subr.bf16.mxu1 %v690_v42 }
  0x2a   :  { %322 = vmatmul.mubr.f32.gmra.mrb[2].mxu1 %v62_v47  ;;  %693 = vmatpush3.bf16.msra.mxu0 %v690_v42 }
  0x2b   :  { %707 = vmatpush3.bf16.msra.mxu1 %v690_v42  ;;  %241 = vmatprep.mubr.f32.mxu0 %v66_v48 }
  0x2c   :  { %326 = vmatprep.mubr.f32.mxu1 %v68_v50  ;;  %695 = vmatprep.subr.bf16.mxu0 %v694_v49 }
  0x2d   :  { %242 = vmatmul.mubr.f32.gmra.mrb[4].mxu0 %v65_v53  ;;  %704 = vmatprep.subr.bf16.mxu1 %v694_v49 }
  0x2e   :  { %327 = vmatmul.mubr.f32.gmra.mrb[4].mxu1 %v67_v54  ;;  %697 = vmatpush3.bf16.msra.mxu0 %v694_v49 }
  0x2f   :  { %708 = vmatpush3.bf16.msra.mxu1 %v694_v49  ;;  %246 = vmatprep.mubr.f32.mxu0 %v71_v55 }
  0x30   :  { %331 = vmatprep.mubr.f32.mxu1 %v73_v57  ;;  %699 = vmatprep.subr.bf16.mxu0 %v698_v56 }
  0x31   :  { %247 = vmatmul.mubr.f32.gmra.mrb[6].mxu0 %v70_v58  ;;  %705 = vmatprep.subr.bf16.mxu1 %v698_v56 }
  0x32   :  { %332 = vmatmul.mubr.f32.gmra.mrb[6].mxu1 %v72_v59  ;;  %701 = vmatpush3.bf16.msra.mxu0 %v698_v56 }
  0x33   :  { %709 = vmatpush3.bf16.msra.mxu1 %v698_v56  ;;  %616 = vmatprep.mubr.msk.f32.mxu0 %vm154_vm0, %v59_v60 }
  0x34   :  { %619 = vmatprep.mubr.msk.f32.mxu1 %vm154_vm0, %v69_v61  ;;  %v431_v61 = vld [vmem:[%s1045_s4] sm:$0x1] }
  0x35   :  { %617 = vmatmul.mubr.msk.f32.vlgmr.msra.gmra.mrb[8].mxu0 %vm154_vm0, %v64_v62 }
  0x36   :  { %620 = vmatmul.mubr.msk.f32.vlgmr.msra.gmra.mrb[8].mxu1 %vm154_vm0, %v74_v63 }
  0xf8   :  { %v532_v1 = vpop.f32.mrb[0].mxu0 }
  0xf9   :  { %v533_v3 = vpop.f32.mrb[1].mxu0  ;;  %v576_v4 = vpop.f32.mrb[0].mxu1 }
  0xfa   :  { %v534_v5 = vadd.f32 %v533_v3, %v532_v1  ;;  %v577_v6 = vpop.f32.mrb[1].mxu1 }
  0xfb   :  { %v578_v7 = vadd.f32 %v577_v6, %v576_v4 }
  0xfc   :  { %v234_v8 = vadd.f32 %v534_v5, %v495_v2  ;;  %v535_v9 = vpop.f32.mrb[2].mxu0 }
  0xfd   :  { %v536_v10 = vpop.f32.mrb[3].mxu0  ;;  %v579_v11 = vpop.f32.mrb[2].mxu1 }
  0xfe   :  { %v537_v12 = vadd.f32 %v536_v10, %v535_v9  ;;  %v580_v13 = vpop.f32.mrb[3].mxu1  ;;  %v319_v14 = vadd.f32 %v578_v7, %v234_v8 }
  0xff   :  { %v581_v15 = vadd.f32 %v580_v13, %v579_v11 }
 0x100   :  { %v239_v16 = vadd.f32 %v537_v12, %v495_v2  ;;  %v538_v17 = vpop.f32.mrb[4].mxu0 }
 0x101   :  { %v539_v18 = vpop.f32.mrb[5].mxu0  ;;  %v582_v19 = vpop.f32.mrb[4].mxu1 }
 0x102   :  { %v540_v20 = vadd.f32 %v539_v18, %v538_v17  ;;  %v583_v21 = vpop.f32.mrb[5].mxu1  ;;  %v324_v22 = vadd.f32 %v581_v15, %v239_v16 }
 0x103   :  { %v584_v23 = vadd.f32 %v583_v21, %v582_v19 }
 0x104   :  { %v244_v24 = vadd.f32 %v540_v20, %v495_v2  ;;  %v541_v25 = vpop.f32.mrb[6].mxu0 }
 0x105   :  { %v542_v26 = vpop.f32.mrb[7].mxu0  ;;  %v585_v27 = vpop.f32.mrb[6].mxu1 }
 0x106   :  { %v543_v28 = vadd.f32 %v542_v26, %v541_v25  ;;  %v586_v29 = vpop.f32.mrb[7].mxu1  ;;  %v329_v30 = vadd.f32 %v584_v23, %v244_v24 }
 0x107   :  { %v587_v31 = vadd.f32 %v586_v29, %v585_v27 }
 0x108   :  { %v249_v32 = vadd.f32 %v543_v28, %v495_v2  ;;  %v618_v33 = vpop.f32.mrb[8].mxu0 }
 0x109   :  { %v409_v34 = vadd.f32 %v618_v33, %v324_v22  ;;  %v621_v35 = vpop.f32.mrb[8].mxu1  ;;  %v403_v36 = vpop.f32.mrb[9].mxu0 }
 0x10a   :  { %v334_v37 = vadd.f32 %v587_v31, %v249_v32  ;;  %v404_v38 = vadd.f32 %v403_v36, %v319_v14  ;;  %v413_v39 = vpop.f32.mrb[9].mxu1 }
 0x10b   :  { %423 = vst [vmem:[%s1047_s3 + $0x8] sm:$0xff] %v409_v34  ;;  %v445_v40 = vmul.f32 %v409_v34, %v409_v34  ;;  %v414_v41 = vadd.f32 %v413_v39, %v329_v30 }
 0x10c   :  { %v419_v42 = vadd.f32 %v621_v35, %v334_v37  ;;  %422 = vst [vmem:[%s1047_s3] sm:$0xff] %v404_v38  ;;  %v432_v43 = vadd.f32 %v409_v34, %v404_v38  ;;  %v444_v44 = vmul.f32 %v404_v38, %v404_v38 }
 0x10d   :  { %424 = vst [vmem:[%s1047_s3 + $0x10] sm:$0xff] %v414_v41  ;;  %v446_v47 = vmul.f32 %v414_v41, %v414_v41 }
 0x10e   :  { %425 = vst [vmem:[%s1047_s3 + $0x18] sm:$0xff] %v419_v42  ;;  %v448_v45 = vadd.f32 %v445_v40, %v444_v44  ;;  %v433_v46 = vadd.f32 %v432_v43, %v414_v41  ;;  %v447_v48 = vmul.f32 %v419_v42, %v419_v42 }
 0x110   :  { %v434_v49 = vadd.f32 %v433_v46, %v419_v42  ;;  %v449_v50 = vadd.f32 %v448_v45, %v446_v47 }
 0x112   :  { %v435_v51 = vrot.slane %v434_v49, 4  ;;  %v450_v52 = vadd.f32 %v449_v50, %v447_v48 }
 0x114   :  { %v436_v53 = vadd.f32 %v435_v51, %v434_v49  ;;  %v451_v54 = vrot.slane %v450_v52, 4 }
 0x116   :  { %v437_v55 = vrot.slane %v436_v53, 2  ;;  %v452_v56 = vadd.f32 %v451_v54, %v450_v52 }
 0x118   :  { %v438_v57 = vadd.f32 %v437_v55, %v436_v53  ;;  %v453_v58 = vrot.slane %v452_v56, 2 }
 0x11a   :  { %v439_v59 = vrot.slane %v438_v57, 1  ;;  %v454_v60 = vadd.f32 %v453_v58, %v452_v56 }
 0x11c   :  { %v440_v62 = vadd.f32 %v439_v59, %v438_v57  ;;  %v455_v63 = vrot.slane %v454_v60, 1 }
 0x11e   :  { %v441_v1 = vadd.f32 %v440_v62, %v431_v61  ;;  %v456_v2 = vadd.f32 %v455_v63, %v454_v60 }
 0x120   :  { %442 = vst [vmem:[%s1045_s4] sm:$0x1] %v441_v1  ;;  %v457_v3 = vadd.f32 %v456_v2, %v443_v0 }
 0x122   :  { %458 = vst [vmem:[%s1045_s4 + $0x1] sm:$0x1] %v457_v3 }

</bundles_post_ra>
